<compile_context>
chip_gen: v7x
topology: tpu7x:2x2x1
jax: 0.10.0
libtpu: 0.0.40
codegen_flags: <defaults>
</compile_context>

<pallas_src>
from functools import partial

import jax
import jax.numpy as jnp
from jax.experimental import pallas as pl
from jax.experimental.pallas import tpu as pltpu


def _qkv_kernel(x_ref, wq_ref, wk_ref, wv_ref, bq_ref, bk_ref, bv_ref,
                q_ref, k_ref, v_ref):
    # x_ref: (tm, C) f32      w*_ref: (C, D) bf16 (VMEM-resident)
    # b*_ref: (1, D) f32      q/k/v_ref: (tm, D) f32
    xb = x_ref[...].astype(jnp.bfloat16)          # in-kernel cast (VPU, free here)
    q_ref[...] = (jnp.dot(xb, wq_ref[...], preferred_element_type=jnp.float32)
                  + bq_ref[...]).astype(q_ref.dtype)
    k_ref[...] = (jnp.dot(xb, wk_ref[...], preferred_element_type=jnp.float32)
                  + bk_ref[...]).astype(k_ref.dtype)
    v_ref[...] = (jnp.dot(xb, wv_ref[...], preferred_element_type=jnp.float32)
                  + bv_ref[...]).astype(v_ref.dtype)


def prepare_spatial_projection_params(wq_t, bq, wk_t, bk, wv_t, bv):
    """One-time parameter prep (hoisted out of the per-forward path).

    w*_t: (C, D) transposed Linear weights -> bf16 MXU operands.
    b*:   biases -> (1, D) f32 row vectors.
    """
    D = wq_t.shape[1]
    as_w = lambda w: jnp.asarray(w).astype(jnp.bfloat16)
    as_b = lambda b: jnp.asarray(b, jnp.float32).reshape(1, D)
    return (as_w(wq_t), as_w(wk_t), as_w(wv_t), as_b(bq), as_b(bk), as_b(bv))


@partial(jax.jit, static_argnames=("tm",))
def spatial_projection_head(x, params, *, tm=512):
    """x: (B, C) float32.  params: output of prepare_spatial_projection_params.
    Returns (q, k, v), each (B, 1, D), matching the torch module."""
    wq, wk, wv, bq, bk, bv = params
    B, C = x.shape
    D = wq.shape[1]

    # Row tile: multiple of 8 (f32 sublane), capped by `tm`, and small enough
    # that the batch grid has >= 4 steps when B allows it (so v7x can shard the
    # "parallel" axis across both TensorCores).  Bigger tiles (512-2048) on
    # v5e/v6e amortize the ~0.35us/step pipeline overhead for large B.
    cap = max(8, (int(tm) // 8) * 8)
    want = ((pl.cdiv(B, 4) + 7) // 8) * 8
    tm_eff = max(8, min(cap, want))
    grid = (pl.cdiv(B, tm_eff),)   # non-divisible B: Pallas masks the edge block

    flops = 2 * B * C * (3 * D)
    bytes_accessed = (B * C * 4            # x (f32)
                      + 3 * C * D * 2      # weights (bf16, read once)
                      + 3 * D * 4          # biases
                      + 3 * B * D * 4)     # q, k, v (f32)
    cost = pl.CostEstimate(flops=flops, transcendentals=0,
                           bytes_accessed=bytes_accessed)

    q, k, v = pl.pallas_call(
        _qkv_kernel,
        out_shape=(
            jax.ShapeDtypeStruct((B, D), jnp.float32),
            jax.ShapeDtypeStruct((B, D), jnp.float32),
            jax.ShapeDtypeStruct((B, D), jnp.float32),
        ),
        grid_spec=pltpu.PrefetchScalarGridSpec(
            num_scalar_prefetch=0,
            grid=grid,
            in_specs=[
                pl.BlockSpec((tm_eff, C), lambda i: (i, 0)),   # x tile (pipelined)
                pl.BlockSpec((C, D), lambda i: (0, 0)),        # Wq (resident)
                pl.BlockSpec((C, D), lambda i: (0, 0)),        # Wk (resident)
                pl.BlockSpec((C, D), lambda i: (0, 0)),        # Wv (resident)
                pl.BlockSpec((1, D), lambda i: (0, 0)),        # bq (resident)
                pl.BlockSpec((1, D), lambda i: (0, 0)),        # bk (resident)
                pl.BlockSpec((1, D), lambda i: (0, 0)),        # bv (resident)
            ],
            out_specs=(
                pl.BlockSpec((tm_eff, D), lambda i: (i, 0)),
                pl.BlockSpec((tm_eff, D), lambda i: (i, 0)),
                pl.BlockSpec((tm_eff, D), lambda i: (i, 0)),
            ),
        ),
        compiler_params=pltpu.CompilerParams(
            dimension_semantics=("parallel",),        # megacore / v7x dual-TC
            vmem_limit_bytes=32 * 1024 * 1024,        # explicit (v5e default is 16 MiB)
        ),
        cost_estimate=cost,
    )(x, wq, wk, wv, bq, bk, bv)

    # Re-attach the singleton "spatial" axis from view(B, C, 1).permute(0, 2, 1)
    # -- a unit-dim reshape only, no data movement.
    return q.reshape(B, 1, D), k.reshape(B, 1, D), v.reshape(B, 1, D)


def _init_linear_params(key, in_dim, out_dim):
    """Deterministic init mimicking torch.nn.Linear (uniform +/- 1/sqrt(in_dim)).
    Returns W^T of shape (in_dim, out_dim) and bias of shape (1, out_dim)."""
    k_w, k_b = jax.random.split(key)
    bound = 1.0 / jnp.sqrt(jnp.float32(in_dim))
    w_t = jax.random.uniform(k_w, (in_dim, out_dim), jnp.float32,
                             minval=-bound, maxval=bound)
    b = jax.random.uniform(k_b, (1, out_dim), jnp.float32,
                           minval=-bound, maxval=bound)
    return w_t, b


if __name__ == "__main__":
    # Small shapes consistent with the module; the tm heuristic picks an 8-row
    # tile -> a 3-step pipelined batch grid.
    B, input_dim, output_dim = 24, 128, 64

    root = jax.random.PRNGKey(0)
    k_x, k_q, k_k, k_v = jax.random.split(root, 4)

    x = jax.random.normal(k_x, (B, input_dim), jnp.float32)
    wq_t, bq = _init_linear_params(k_q, input_dim, output_dim)
    wk_t, bk = _init_linear_params(k_k, input_dim, output_dim)
    wv_t, bv = _init_linear_params(k_v, input_dim, output_dim)

    # One-time prep (would live next to module init in a real model).
    params = prepare_spatial_projection_params(wq_t, bq, wk_t, bk, wv_t, bv)

    q, k, v = spatial_projection_head(x, params)
    jax.block_until_ready((q, k, v))

    assert q.shape == (B, 1, output_dim)
    assert k.shape == (B, 1, output_dim)
    assert v.shape == (B, 1, output_dim)

    # --- Reference checks -----------------------------------------------------
    # (a) tight check vs. a reference using the same bf16-rounded operands with
    #     f32 accumulation (isolates kernel correctness from quantization).
    xb = x.astype(jnp.bfloat16).astype(jnp.float32)

    def bf16_ref(w_t, b):
        wb = w_t.astype(jnp.bfloat16).astype(jnp.float32)
        return (xb @ wb + b).reshape(B, 1, output_dim)

    assert jnp.allclose(q, bf16_ref(wq_t, bq), atol=1e-4, rtol=1e-4)
    assert jnp.allclose(k, bf16_ref(wk_t, bk), atol=1e-4, rtol=1e-4)
    assert jnp.allclose(v, bf16_ref(wv_t, bv), atol=1e-4, rtol=1e-4)

    # (b) loose check vs. the exact f32 torch-module semantics
    #     (x.view(B,C,1).permute(0,2,1) @ W^T + b).
    x3 = x.reshape(B, input_dim, 1).transpose(0, 2, 1)       # (B, 1, C)
    assert jnp.allclose(q, x3 @ wq_t + bq, atol=3e-2)
    assert jnp.allclose(k, x3 @ wk_t + bk, atol=3e-2)
    assert jnp.allclose(v, x3 @ wv_t + bv, atol=3e-2)

    print("KERNEL_OK")
</pallas_src>

<mosaic_0001>
module attributes {stable_mosaic.version = 11 : i64} {
  func.func @_qkv_kernel(%arg0: i32, %arg1: memref<8x128xf32, #tpu.memory_space<vmem>>, %arg2: memref<128x64xbf16, #tpu.memory_space<vmem>>, %arg3: memref<128x64xbf16, #tpu.memory_space<vmem>>, %arg4: memref<128x64xbf16, #tpu.memory_space<vmem>>, %arg5: memref<1x64xf32, #tpu.memory_space<vmem>>, %arg6: memref<1x64xf32, #tpu.memory_space<vmem>>, %arg7: memref<1x64xf32, #tpu.memory_space<vmem>>, %arg8: memref<8x64xf32, #tpu.memory_space<vmem>>, %arg9: memref<8x64xf32, #tpu.memory_space<vmem>>, %arg10: memref<8x64xf32, #tpu.memory_space<vmem>>) attributes {dimension_semantics = [#tpu.dimension_semantics<parallel>], iteration_bounds = array<i64: 3>, scalar_prefetch = 0 : i64, scratch_operands = 0 : i64, tpu.core_type = #tpu.core_type<tc>, window_params = [{transform_indices = @transform_0, window_bounds = array<i64: 8, 128>}, {pipeline_mode = #tpu.pipeline_mode<synchronous>, transform_indices = @transform_1, window_bounds = array<i64: 128, 64>}, {pipeline_mode = #tpu.pipeline_mode<synchronous>, transform_indices = @transform_2, window_bounds = array<i64: 128, 64>}, {pipeline_mode = #tpu.pipeline_mode<synchronous>, transform_indices = @transform_3, window_bounds = array<i64: 128, 64>}, {pipeline_mode = #tpu.pipeline_mode<synchronous>, transform_indices = @transform_4, window_bounds = array<i64: 1, 64>}, {pipeline_mode = #tpu.pipeline_mode<synchronous>, transform_indices = @transform_5, window_bounds = array<i64: 1, 64>}, {pipeline_mode = #tpu.pipeline_mode<synchronous>, transform_indices = @transform_6, window_bounds = array<i64: 1, 64>}, {transform_indices = @transform_7, window_bounds = array<i64: 8, 64>}, {transform_indices = @transform_8, window_bounds = array<i64: 8, 64>}, {transform_indices = @transform_9, window_bounds = array<i64: 8, 64>}]} {
    %c0 = arith.constant 0 : index
    %c0_0 = arith.constant 0 : index
    %0 = vector.load %arg1[%c0, %c0_0] : memref<8x128xf32, #tpu.memory_space<vmem>>, vector<8x128xf32>
    %1 = arith.truncf %0 : vector<8x128xf32> to vector<8x128xbf16>
    %c0_1 = arith.constant 0 : index
    %c0_2 = arith.constant 0 : index
    %2 = vector.load %arg2[%c0_1, %c0_2] : memref<128x64xbf16, #tpu.memory_space<vmem>>, vector<128x64xbf16>
    %cst = arith.constant dense<0.000000e+00> : vector<8x64xf32>
    %3 = tpu.matmul %1, %2, %cst {dimension_numbers = #tpu.dot_dimension_numbers<[1], [0], [0], [1], [0, 0, 1, 1], [], []>} : vector<8x128xbf16>, vector<128x64xbf16>, vector<8x64xf32> -> vector<8x64xf32>
    %c0_3 = arith.constant 0 : index
    %c0_4 = arith.constant 0 : index
    %4 = vector.load %arg5[%c0_3, %c0_4] : memref<1x64xf32, #tpu.memory_space<vmem>>, vector<1x64xf32>
    %5 = vector.broadcast %4 : vector<1x64xf32> to vector<8x64xf32>
    %6 = arith.addf %3, %5 : vector<8x64xf32>
    %c0_5 = arith.constant 0 : index
    %c0_6 = arith.constant 0 : index
    %7 = vector.load %arg8[%c0_5, %c0_6] : memref<8x64xf32, #tpu.memory_space<vmem>>, vector<8x64xf32>
    tpu.vector_store %arg8[%c0_5, %c0_6], %6 {strides = array<i32>} : memref<8x64xf32, #tpu.memory_space<vmem>>, vector<8x64xf32>,
    %c0_7 = arith.constant 0 : index
    %c0_8 = arith.constant 0 : index
    %8 = vector.load %arg3[%c0_7, %c0_8] : memref<128x64xbf16, #tpu.memory_space<vmem>>, vector<128x64xbf16>
    %cst_9 = arith.constant dense<0.000000e+00> : vector<8x64xf32>
    %9 = tpu.matmul %1, %8, %cst_9 {dimension_numbers = #tpu.dot_dimension_numbers<[1], [0], [0], [1], [0, 0, 1, 1], [], []>} : vector<8x128xbf16>, vector<128x64xbf16>, vector<8x64xf32> -> vector<8x64xf32>
    %c0_10 = arith.constant 0 : index
    %c0_11 = arith.constant 0 : index
    %10 = vector.load %arg6[%c0_10, %c0_11] : memref<1x64xf32, #tpu.memory_space<vmem>>, vector<1x64xf32>
    %11 = vector.broadcast %10 : vector<1x64xf32> to vector<8x64xf32>
    %12 = arith.addf %9, %11 : vector<8x64xf32>
    %c0_12 = arith.constant 0 : index
    %c0_13 = arith.constant 0 : index
    %13 = vector.load %arg9[%c0_12, %c0_13] : memref<8x64xf32, #tpu.memory_space<vmem>>, vector<8x64xf32>
    tpu.vector_store %arg9[%c0_12, %c0_13], %12 {strides = array<i32>} : memref<8x64xf32, #tpu.memory_space<vmem>>, vector<8x64xf32>,
    %c0_14 = arith.constant 0 : index
    %c0_15 = arith.constant 0 : index
    %14 = vector.load %arg4[%c0_14, %c0_15] : memref<128x64xbf16, #tpu.memory_space<vmem>>, vector<128x64xbf16>
    %cst_16 = arith.constant dense<0.000000e+00> : vector<8x64xf32>
    %15 = tpu.matmul %1, %14, %cst_16 {dimension_numbers = #tpu.dot_dimension_numbers<[1], [0], [0], [1], [0, 0, 1, 1], [], []>} : vector<8x128xbf16>, vector<128x64xbf16>, vector<8x64xf32> -> vector<8x64xf32>
    %c0_17 = arith.constant 0 : index
    %c0_18 = arith.constant 0 : index
    %16 = vector.load %arg7[%c0_17, %c0_18] : memref<1x64xf32, #tpu.memory_space<vmem>>, vector<1x64xf32>
    %17 = vector.broadcast %16 : vector<1x64xf32> to vector<8x64xf32>
    %18 = arith.addf %15, %17 : vector<8x64xf32>
    %c0_19 = arith.constant 0 : index
    %c0_20 = arith.constant 0 : index
    %19 = vector.load %arg10[%c0_19, %c0_20] : memref<8x64xf32, #tpu.memory_space<vmem>>, vector<8x64xf32>
    tpu.vector_store %arg10[%c0_19, %c0_20], %18 {strides = array<i32>} : memref<8x64xf32, #tpu.memory_space<vmem>>, vector<8x64xf32>,
    return
  }
  func.func @transform_0(%arg0: i32) -> (i32, i32) {
    %c0_i32 = arith.constant 0 : i32
    %c0_i32_0 = arith.constant 0 : i32
    return %arg0, %c0_i32 : i32, i32
  }
  func.func @transform_1(%arg0: i32) -> (i32, i32) {
    %c0_i32 = arith.constant 0 : i32
    %c0_i32_0 = arith.constant 0 : i32
    %c0_i32_1 = arith.constant 0 : i32
    return %c0_i32, %c0_i32_0 : i32, i32
  }
  func.func @transform_2(%arg0: i32) -> (i32, i32) {
    %c0_i32 = arith.constant 0 : i32
    %c0_i32_0 = arith.constant 0 : i32
    %c0_i32_1 = arith.constant 0 : i32
    return %c0_i32, %c0_i32_0 : i32, i32
  }
  func.func @transform_3(%arg0: i32) -> (i32, i32) {
    %c0_i32 = arith.constant 0 : i32
    %c0_i32_0 = arith.constant 0 : i32
    %c0_i32_1 = arith.constant 0 : i32
    return %c0_i32, %c0_i32_0 : i32, i32
  }
  func.func @transform_4(%arg0: i32) -> (i32, i32) {
    %c0_i32 = arith.constant 0 : i32
    %c0_i32_0 = arith.constant 0 : i32
    %c0_i32_1 = arith.constant 0 : i32
    return %c0_i32, %c0_i32_0 : i32, i32
  }
  func.func @transform_5(%arg0: i32) -> (i32, i32) {
    %c0_i32 = arith.constant 0 : i32
    %c0_i32_0 = arith.constant 0 : i32
    %c0_i32_1 = arith.constant 0 : i32
    return %c0_i32, %c0_i32_0 : i32, i32
  }
  func.func @transform_6(%arg0: i32) -> (i32, i32) {
    %c0_i32 = arith.constant 0 : i32
    %c0_i32_0 = arith.constant 0 : i32
    %c0_i32_1 = arith.constant 0 : i32
    return %c0_i32, %c0_i32_0 : i32, i32
  }
  func.func @transform_7(%arg0: i32) -> (i32, i32) {
    %c0_i32 = arith.constant 0 : i32
    %c0_i32_0 = arith.constant 0 : i32
    return %arg0, %c0_i32 : i32, i32
  }
  func.func @transform_8(%arg0: i32) -> (i32, i32) {
    %c0_i32 = arith.constant 0 : i32
    %c0_i32_0 = arith.constant 0 : i32
    return %arg0, %c0_i32 : i32, i32
  }
  func.func @transform_9(%arg0: i32) -> (i32, i32) {
    %c0_i32 = arith.constant 0 : i32
    %c0_i32_0 = arith.constant 0 : i32
    return %arg0, %c0_i32 : i32, i32
  }
}

</mosaic_0001>

<bundles_post_ra>
// kernel: spatial_projection_head.1
= control target key start
LH: loop header
LB: loop body
LE: loop exit
PB: predicated region body
PF: predicated region fallthrough
CT: control target
= control target key end

     0   :  { %s1529_s0 = inlined_call_operand.vmem [shape: f32[24,128], index: 0, kind: input, shape index: {}]   ;;  %s1530_s1 = inlined_call_operand.vmem [shape: bf16[128,64], index: 1, kind: input, shape index: {}]   ;;  %s1531_s2 = inlined_call_operand.vmem [shape: bf16[128,64], index: 2, kind: input, shape index: {}]   ;;  %s1532_s3 = inlined_call_operand.vmem [shape: bf16[128,64], index: 3, kind: input, shape index: {}]   ;;  %s1533_s4 = inlined_call_operand.vmem [shape: f32[1,64], index: 4, kind: input, shape index: {}]   ;;  %s1534_s5 = inlined_call_operand.vmem [shape: f32[1,64], index: 5, kind: input, shape index: {}]   ;;  %s1535_s6 = inlined_call_operand.vmem [shape: f32[1,64], index: 6, kind: input, shape index: {}]   ;;  %s1536_s7 = inlined_call_operand.hbm [shape: f32[24,64], index: 7, kind: output, shape index: {0}]   ;;  %s1537_s8 = inlined_call_operand.hbm [shape: f32[24,64], index: 8, kind: output, shape index: {1}]   ;;  %s1538_s9 = inlined_call_operand.hbm [shape: f32[24,64], index: 9, kind: output, shape index: {2}]  }
   0x1   :  { %1540 = sst [smem:[#allocation9_spill]] %s1529_s0 }
   0x2   :  { %15 = vsyncpa [#allocation3], 0 }
   0x3   :  { %17 = vsyncpa [#allocation3 + $0x1], 0 }
   0x4   :  { %18 = vsyncpa [#allocation5], 0 }
   0x5   :  { %20 = vsyncpa [#allocation5 + $0x1], 0  ;;  %s1240_s30 = smov 0   ;;  %s1242_s10 = smov 0  }
   0x6   :  { %s1244_s11 = smov 0   ;;  %s1246_s12 = smov 0  }
   0x7 LB: > { %s1261_s13 = sadd.s32 4294967295, %s1183_s12   ;;  %s1539_s14 = sadd.s32 4294967294, %s1183_s12   ;;  %s1183_s12 = sphi %s1246_s12, %s1548_s12   ;;  %s1179_s11 = sphi %s1244_s11, %s1547_s11   ;;  %s1175_s10 = sphi %s1242_s10, %s1546_s10   ;;  %s1171_s30 = sphi %s1240_s30, %s1545_s30  }
   0x8   : > { %s1265_s15 = sadd.s32 1, %s1183_s12   ;;  %s185_s16 = sadd.s32 1, %s1179_s11 }
   0x9   : > { %s182_s17 = ssub.s32 %s1183_s12, %s1265_s15  ;;  %p195_p0 = scmp.ne.s32.totalorder %s1179_s11, %s1175_s10 }
   0xa   : > { %p183_p1 = scmp.eq.s32.totalorder %s182_s17, 0  ;;  %p196_p2 = scmp.eq.s32.totalorder %s1261_s13, 2 }
   0xb   : > { %p201_p3 = scmp.ne.s32.totalorder %s1175_s10, %s1171_s30  ;;  %p202_p4 = scmp.eq.s32.totalorder %s1539_s14, 2 }
   0xc   : > { %s1278_s18 = scalar_select %p183_p1, %s1179_s11, %s185_s16  }
   0xd   : > { %p1280_p5 = por %p196_p2, %p195_p0  ;;  %p1284_p6 = por %p202_p4, %p201_p3 }
   0xe   : > { %p859_p7 = scmp.ge.s32.totalorder %s1183_s12, 1  ;;  %p297_p8 = scmp.lt.s32.totalorder %s1183_s12, 4 }
  0x10   : > { %p298_p9 = pnand %p859_p7, %p297_p8 }
  0x11   : > { %v1037_v0 = vld [vmem:[%s1530_s1] sm:$0xff] (!%p298_p9)   ;;  %v1185_v1 = vmov (!%p298_p9), 0.0   ;;  %v1038_v2 = vld [vmem:[%s1530_s1 + $0x8] sm:$0xff] (!%p298_p9)   ;;  %vm1186_vm0 = vmmov (!%p298_p9), 0   ;;  %v1039_v3 = vld [vmem:[%s1530_s1 + $0x10] sm:$0xff] (!%p298_p9)   ;;  %p342_p10 = scmp.lt.s32.totalorder (!%p298_p9), %s1261_s13, 2 }
  0x12   : > { %301 = sbr.rel (%p298_p9) target bundleno = 327 (0x147), region = 48  ;;  %926 = vmatprep.subr.bf16.mxu0 (!%p298_p9), %v1185_v1  ;;  %946 = vmatprep.subr.bf16.mxu1 (!%p298_p9), %v1185_v1  ;;  %v1045_v4 = vld [vmem:[%s1531_s2] sm:$0xff] (!%p298_p9)   ;;  %v1040_v5 = vld [vmem:[%s1530_s1 + $0x18] sm:$0xff] (!%p298_p9)   ;;  %v1046_v6 = vld [vmem:[%s1531_s2 + $0x8] sm:$0xff] (!%p298_p9)   ;;  %s1543_s0 = sld [smem:[#allocation9_spill]] (!%p298_p9)  ;;  %vm460_vm1 = vcmask (!%p298_p9), 523264  }
  0x13   : > { %927 = vmatpush3.bf16.msra.mxu0 (!%p298_p9), %v1037_v0  ;;  %942 = vmatprep.mubr.msk.bf16.mxu0 (!%p298_p9), %vm1186_vm0, %v1185_v1  ;;  %v1041_v7 = vld [vmem:[%s1530_s1 + $0x20] sm:$0xff] (!%p298_p9)   ;;  %v1048_v8 = vld [vmem:[%s1531_s2 + $0x10] sm:$0xff] (!%p298_p9)   ;;  %v1042_v9 = vld [vmem:[%s1530_s1 + $0x28] sm:$0xff] (!%p298_p9)   ;;  %s325_s16 = sand.u32 (!%p298_p9), 1, %s1175_s10   ;;  %s1404_s23 = sshll.u32 (!%p298_p9), %s1261_s13, 7 }
  0x14   : > { %928 = vmatprep.subr.bf16.mxu0 (!%p298_p9), %v1185_v1  ;;  %962 = vmatprep.mubr.msk.bf16.mxu1 (!%p298_p9), %vm1186_vm0, %v1185_v1  ;;  %v1050_v10 = vld [vmem:[%s1531_s2 + $0x18] sm:$0xff] (!%p298_p9)   ;;  %v1043_v11 = vld [vmem:[%s1530_s1 + $0x30] sm:$0xff] (!%p298_p9)   ;;  %v1052_v12 = vld [vmem:[%s1531_s2 + $0x20] sm:$0xff] (!%p298_p9)   ;;  %s1398_s21 = sshll.u32 (!%p298_p9), %s325_s16, 3  ;;  %s687_s29 = scalar_lea.sflag (!%p298_p9), [#allocation3], %s325_s16 }
  0x15   : > { %947 = vmatpush3.bf16.msra.mxu1 (!%p298_p9), %v1045_v4  ;;  %v1044_v13 = vld [vmem:[%s1530_s1 + $0x38] sm:$0xff] (!%p298_p9)   ;;  %v1054_v15 = vld [vmem:[%s1531_s2 + $0x28] sm:$0xff] (!%p298_p9)   ;;  %v1047_v17 = vld [vmem:[%s1532_s3] sm:$0xff] (!%p298_p9)   ;;  %s327_s24 = scalar_lea.vmem (!%p298_p9), [#allocation2], %s1398_s21  ;;  %s1187_s22 = smov (!%p298_p9), [#allocation2]  }
  0x16   : > { %948 = vmatprep.subr.bf16.mxu1 (!%p298_p9), %v1185_v1  ;;  %v1056_v18 = vld [vmem:[%s1531_s2 + $0x30] sm:$0xff] (!%p298_p9)   ;;  %v1049_v19 = vld [vmem:[%s1532_s3 + $0x8] sm:$0xff] (!%p298_p9)   ;;  %v1058_v20 = vld [vmem:[%s1531_s2 + $0x38] sm:$0xff] (!%p298_p9)   ;;  %s710_s25 = sshll.u32 (!%p298_p9), %s327_s24, 4  ;;  %s1065_s14 = sshll.u32 (!%p298_p9), %s1187_s22, 4  ;;  %s1413_s25 = int_to_ptr.vmem [resolvable:$true] %s710_s25  ;;  %s1066_s14 = int_to_ptr.vmem [resolvable:$false] %s1065_s14 }
  0x17   : > { %929 = vmatpush3.bf16.msra.mxu0 (!%p298_p9), %v1038_v2  ;;  %v1051_v21 = vld [vmem:[%s1532_s3 + $0x10] sm:$0xff] (!%p298_p9)   ;;  %v1053_v22 = vld [vmem:[%s1532_s3 + $0x18] sm:$0xff] (!%p298_p9)   ;;  %v1055_v23 = vld [vmem:[%s1532_s3 + $0x20] sm:$0xff] (!%p298_p9)   ;;  %s1067_s27 = scalar_lea.vmem (!%p298_p9), %s1066_s14, 256  ;;  %p1068_p0 = scmp.lt.s32.totalorder (!%p298_p9), %s1413_s25, %s1066_s14 }
  0x18   : > { %930 = vmatprep.subr.bf16.mxu0 (!%p298_p9), %v1185_v1  ;;  %v1057_v24 = vld [vmem:[%s1532_s3 + $0x28] sm:$0xff] (!%p298_p9)   ;;  %v1059_v25 = vld [vmem:[%s1532_s3 + $0x30] sm:$0xff] (!%p298_p9)   ;;  %v1060_v26 = vld [vmem:[%s1532_s3 + $0x38] sm:$0xff] (!%p298_p9)  }
  0x19   : > { %949 = vmatpush3.bf16.msra.mxu1 %v1046_v6  ;;  %s343_s26 = scalar_select %p342_p10, %s1261_s13, 2  ;;  %v864_v27 = vld [vmem:[%s1533_s4] ss:$0 sm:$0xff] }
  0x1a   : > { %950 = vmatprep.subr.bf16.mxu1 %v1185_v1 }
  0x1b   : > { %931 = vmatpush3.bf16.msra.mxu0 %v1039_v3  ;;  %s863_s17 = sshll.u32 %s343_s26, 3  ;;  %s1411_s26 = scalar_lea.hbm %s1536_s7, %s1404_s23 }
  0x1c   : > { %932 = vmatprep.subr.bf16.mxu0 %v1185_v1  ;;  %s345_s28 = scalar_lea.vmem %s1543_s0, %s863_s17  ;;  %s1061_s17 = scalar_lea.vmem %s1413_s25, 128 }
  0x1d   : > { %951 = vmatpush3.bf16.msra.mxu1 %v1048_v8  ;;  %v347_v14 = vld [vmem:[%s345_s28] sm:$0xff]  ;;  %p1062_p11 = scmp.ne.s32.totalorder %s1413_s25, %s1061_s17  ;;  %p1069_p1 = scmp.lt.s32.totalorder %s1067_s27, %s1061_s17 }
  0x1e   : > { %952 = vmatprep.subr.bf16.mxu1 %v1185_v1  ;;  %v348_v16 = vpack.c.bf16 %v347_v14, %v347_v14 }
  0x1f   : > { %933 = vmatpush3.bf16.msra.mxu0 %v1040_v5  ;;  %p1063_p12 = pnand %p1062_p11, %p1280_p5  ;;  %p1070_p2 = por %p1069_p1, %p1068_p0 }
  0x20   : > { %934 = vmatprep.subr.bf16.mxu0 %v1185_v1 }
  0x21   : > { %953 = vmatpush3.bf16.msra.mxu1 %v1050_v10  ;;  %p1064_p13 = pneg %p1063_p12 }
  0x22   : > { %954 = vmatprep.subr.bf16.mxu1 %v1185_v1 }
  0x23   : > { %935 = vmatpush3.bf16.msra.mxu0 %v1041_v7  ;;  %p1071_p3 = pnand %p1070_p2, %p1064_p13 }
  0x24   : > { %936 = vmatprep.subr.bf16.mxu0 %v1185_v1 }
  0x25   : > { %955 = vmatpush3.bf16.msra.mxu1 %v1052_v12 }
  0x26   : > { %956 = vmatprep.subr.bf16.mxu1 %v1185_v1 }
  0x27   : > { %937 = vmatpush3.bf16.msra.mxu0 %v1042_v9 }
  0x28   : > { %938 = vmatprep.subr.bf16.mxu0 %v1185_v1 }
  0x29   : > { %957 = vmatpush3.bf16.msra.mxu1 %v1054_v15 }
  0x2a   : > { %958 = vmatprep.subr.bf16.mxu1 %v1185_v1 }
  0x2b   : > { %939 = vmatpush3.bf16.msra.mxu0 %v1043_v11 }
  0x2c   : > { %940 = vmatprep.subr.bf16.mxu0 %v1185_v1 }
  0x2d   : > { %959 = vmatpush3.bf16.msra.mxu1 %v1056_v18 }
  0x2e   : > { %960 = vmatprep.subr.bf16.mxu1 %v1185_v1 }
  0x2f   : > { %941 = vmatpush3.bf16.msra.mxu0 %v1044_v13 }
  0x30   : > { %966 = vmatprep.subr.bf16.mxu0 %v1185_v1 }
  0x31   : > { %961 = vmatpush3.bf16.msra.mxu1 %v1058_v20 }
  0x32   : > { %943 = vmatmul.mubr.bf16.vlgmr.msra.gmra.mrb[0].mxu0 %v348_v16 }
  0x33   : > { %967 = vmatpush3.bf16.msra.mxu0 %v1047_v17  ;;  %982 = vmatprep.mubr.msk.bf16.mxu0 %vm1186_vm0, %v1185_v1 }
  0x34   : > { %968 = vmatprep.subr.bf16.mxu0 %v1185_v1  ;;  %963 = vmatmul.mubr.bf16.vlgmr.msra.gmra.mrb[0].mxu1 %v348_v16 }
  0x37   : > { %969 = vmatpush3.bf16.msra.mxu0 %v1049_v19 }
  0x38   : > { %970 = vmatprep.subr.bf16.mxu0 %v1185_v1 }
  0x3b   : > { %971 = vmatpush3.bf16.msra.mxu0 %v1051_v21 }
  0x3c   : > { %972 = vmatprep.subr.bf16.mxu0 %v1185_v1 }
  0x3f   : > { %973 = vmatpush3.bf16.msra.mxu0 %v1053_v22 }
  0x40   : > { %974 = vmatprep.subr.bf16.mxu0 %v1185_v1 }
  0x43   : > { %975 = vmatpush3.bf16.msra.mxu0 %v1055_v23 }
  0x44   : > { %976 = vmatprep.subr.bf16.mxu0 %v1185_v1 }
  0x47   : > { %977 = vmatpush3.bf16.msra.mxu0 %v1057_v24 }
  0x48   : > { %978 = vmatprep.subr.bf16.mxu0 %v1185_v1 }
  0x4b   : > { %979 = vmatpush3.bf16.msra.mxu0 %v1059_v25 }
  0x4c   : > { %980 = vmatprep.subr.bf16.mxu0 %v1185_v1 }
  0x4f   : > { %981 = vmatpush3.bf16.msra.mxu0 %v1060_v26 }
  0x52   : > { %983 = vmatmul.mubr.bf16.vlgmr.msra.gmra.mrb[4].mxu0 %v348_v16 }
 0x105   : > { %v454_v28 = vpop.f32.mrb[0].mxu0 }
 0x106   : > { %v455_v29 = vadd.f32 %v864_v27, %v454_v28  ;;  %v944_v30 = vpop.f32.mrb[1].mxu0 }
 0x107   : > { %v457_v31 = vpop.f32.mrb[2].mxu0 }
 0x108   : > { %v945_v32 = vpop.f32.mrb[3].mxu0  ;;  %461 = vst.msk [vmem:[%s327_s24] sm:$0xff] %vm460_vm1, %v455_v29 }
 0x109   : > { %1074 = shalt.err (!%p1071_p3)
}
 0x10a   : > { %s1075_s16 = scalar_lea.hbm %s1411_s26, 128  ;;  %s1079_s22 = scalar_lea.hbm %s1536_s7, 384 }
 0x10b   : > { %p1076_p4 = scmp.ne.s32.totalorder %s1411_s26, %s1075_s16  ;;  %p1080_p9 = scmp.lt.u32.totalorder %s1411_s26, %s1536_s7 }
 0x10c   : > { %p1081_p10 = scmp.lt.u32.totalorder %s1079_s22, %s1075_s16  ;;  %p1083_p12 = scmp.lt.u32.totalorder %s1075_s16, %s1411_s26 }
 0x10d   : > { %p1077_p7 = pnand %p1076_p4, %p1280_p5 }
 0x10e   : > { %p1082_p11 = por %p1081_p10, %p1080_p9 }
 0x10f   : > { %p1078_p8 = pneg %p1077_p7 }
 0x110   : > { %p1084_p13 = por %p1083_p12, %p1082_p11 }
 0x112   : > { %p1085_p0 = pnand %p1084_p13, %p1078_p8 }
 0x114   : > { %1088 = shalt.err (!%p1085_p0)
}
 0x115   : > { %986 = dma.vmem_to_hbm [thread:$0]  (%p1280_p5), %s1413_s25, 128, %s1411_s26, %s687_s29   ;;  %v873_v33 = vld [vmem:[%s1534_s5] ss:$0 sm:$0xff]  ;;  %v567_v34 = vpop.f32.mrb[0].mxu1 }
 0x116   : > { %s691_s17 = sand.u32 1, %s1261_s13   ;;  %s334_s0 = scalar_lea.vmem [#allocation4], %s1398_s21  ;;  %v568_v35 = vadd.f32 %v873_v33, %v567_v34  ;;  %v964_v36 = vpop.f32.mrb[1].mxu1 }
 0x117   : > { %s723_s28 = sshll.u32 %s334_s0, 4  ;;  %s1446_s14 = scalar_lea.hbm %s1537_s8, %s1404_s23  ;;  %v570_v37 = vpop.f32.mrb[2].mxu1  ;;  %s1448_s28 = int_to_ptr.vmem [resolvable:$true] %s723_s28 }
 0x118   : > { %v965_v38 = vpop.f32.mrb[3].mxu1  ;;  %573 = vst.msk [vmem:[%s334_s0] sm:$0xff] %vm460_vm1, %v568_v35  ;;  %s1451_s13 = scalar_lea.sflag [#allocation5], %s691_s17  ;;  %s1089_s25 = scalar_lea.vmem %s1448_s28, 128 }
 0x119   : > { %p1090_p1 = scmp.ne.s32.totalorder %s1448_s28, %s1089_s25  ;;  %s1188_s26 = smov [#allocation4]  }
 0x11a   : > { %s1093_s29 = sshll.u32 %s1188_s26, 4  ;;  %s1094_s29 = int_to_ptr.vmem [resolvable:$false] %s1093_s29 }
 0x11b   : > { %p1091_p2 = pnand %p1090_p1, %p1280_p5  ;;  %s1095_s27 = scalar_lea.vmem %s1094_s29, 256 }
 0x11c   : > { %p1096_p4 = scmp.lt.s32.totalorder %s1448_s28, %s1094_s29  ;;  %p1097_p7 = scmp.lt.s32.totalorder %s1095_s27, %s1089_s25 }
 0x11d   : > { %p1092_p3 = pneg %p1091_p2 }
 0x11e   : > { %p1098_p8 = por %p1097_p7, %p1096_p4 }
 0x120   : > { %p1099_p9 = pnand %p1098_p8, %p1092_p3 }
 0x122   : > { %1102 = shalt.err (!%p1099_p9)
}
 0x123   : > { %s1103_s17 = scalar_lea.hbm %s1446_s14, 128  ;;  %s1107_s16 = scalar_lea.hbm %s1537_s8, 384 }
 0x124   : > { %p1104_p10 = scmp.ne.s32.totalorder %s1446_s14, %s1103_s17  ;;  %p1108_p13 = scmp.lt.u32.totalorder %s1446_s14, %s1537_s8 }
 0x125   : > { %p1109_p0 = scmp.lt.u32.totalorder %s1107_s16, %s1103_s17  ;;  %p1111_p2 = scmp.lt.u32.totalorder %s1103_s17, %s1446_s14 }
 0x126   : > { %p1105_p11 = pnand %p1104_p10, %p1280_p5 }
 0x127   : > { %p1110_p1 = por %p1109_p0, %p1108_p13 }
 0x128   : > { %p1106_p12 = pneg %p1105_p11 }
 0x129   : > { %p1112_p3 = por %p1111_p2, %p1110_p1 }
 0x12b   : > { %p1113_p4 = pnand %p1112_p3, %p1106_p12 }
 0x12d   : > { %1116 = shalt.err (!%p1113_p4)
}
 0x12e   : > { %987 = dma.vmem_to_hbm [thread:$0]  (%p1280_p5), %s1448_s28, 128, %s1446_s14, %s1451_s13   ;;  %v882_v39 = vld [vmem:[%s1535_s6] ss:$0 sm:$0xff]  ;;  %v679_v40 = vpop.f32.mrb[4].mxu0 }
 0x12f   : > { %s341_s27 = scalar_lea.vmem [#allocation6], %s1398_s21  ;;  %v680_v41 = vadd.f32 %v882_v39, %v679_v40  ;;  %v984_v42 = vpop.f32.mrb[5].mxu0  ;;  %s1483_s16 = scalar_lea.hbm %s1538_s9, %s1404_s23 }
 0x130   : > { %s736_s24 = sshll.u32 %s341_s27, 4  ;;  %v682_v43 = vpop.f32.mrb[6].mxu0  ;;  %s1189_s21 = smov [#allocation6]   ;;  %s1485_s24 = int_to_ptr.vmem [resolvable:$true] %s736_s24 }
 0x131   : > { %685 = vst.msk [vmem:[%s341_s27] sm:$0xff] %vm460_vm1, %v680_v41  ;;  %v985_v44 = vpop.f32.mrb[7].mxu0  ;;  %s1117_s28 = scalar_lea.vmem %s1485_s24, 128  ;;  %s1121_s14 = sshll.u32 %s1189_s21, 4  ;;  %s1122_s14 = int_to_ptr.vmem [resolvable:$false] %s1121_s14 }
 0x132   : > { %p1118_p7 = scmp.ne.s32.totalorder %s1485_s24, %s1117_s28  ;;  %s1123_s22 = scalar_lea.vmem %s1122_s14, 256 }
 0x133   : > { %p1124_p10 = scmp.lt.s32.totalorder %s1485_s24, %s1122_s14  ;;  %p1125_p11 = scmp.lt.s32.totalorder %s1123_s22, %s1117_s28 }
 0x134   : > { %p1119_p8 = pnand %p1118_p7, %p1280_p5 }
 0x135   : > { %p1126_p12 = por %p1125_p11, %p1124_p10 }
 0x136   : > { %p1120_p9 = pneg %p1119_p8 }
 0x138   : > { %p1127_p13 = pnand %p1126_p12, %p1120_p9 }
 0x13a   : > { %1130 = shalt.err (!%p1127_p13)
}
 0x13b   : > { %s1131_s23 = scalar_lea.hbm %s1483_s16, 128  ;;  %s1135_s29 = scalar_lea.hbm %s1538_s9, 384 }
 0x13c   : > { %p1132_p0 = scmp.ne.s32.totalorder %s1483_s16, %s1131_s23  ;;  %p1136_p3 = scmp.lt.u32.totalorder %s1483_s16, %s1538_s9 }
 0x13d   : > { %p1137_p4 = scmp.lt.u32.totalorder %s1135_s29, %s1131_s23  ;;  %p1139_p8 = scmp.lt.u32.totalorder %s1131_s23, %s1483_s16 }
 0x13e   : > { %p1133_p1 = pnand %p1132_p0, %p1280_p5 }
 0x13f   : > { %p1138_p7 = por %p1137_p4, %p1136_p3 }
 0x140   : > { %p1134_p2 = pneg %p1133_p1 }
 0x141   : > { %p1140_p9 = por %p1139_p8, %p1138_p7 }
 0x143   : > { %p1141_p10 = pnand %p1140_p9, %p1134_p2 }
 0x145   : > { %1144 = shalt.err (!%p1141_p10)
}
 0x146   : > { %988 = dma.vmem_to_hbm [thread:$0]  (%p1280_p5), %s1485_s24, 128, %s1483_s16, %s1451_s13  }
 0x147 PF: > { %p1002_p11 = scmp.ge.s32.totalorder %s1183_s12, 2  ;;  %s748_s0 = sand.u32 1, %s1171_s30  }
 0x148   : > { %s749_s28 = scalar_lea.sflag [#allocation3], %s748_s0 }
 0x149   : > { %p993_p12 = pnand %p1002_p11, %p1284_p6 }
 0x14b   : > { %1162 = dma.done.wait (!%p993_p12), %s749_s28, 128  }
 0x14c   : > { %1164 = vsyncadd (!%p993_p12), %s749_s28, 4294967168  ;;  %s1544_s21 = sadd.s32 4294967294, %s1183_s12  }
 0x14d   : > { %s757_s14 = sand.u32 1, %s1544_s21  }
 0x14e   : > { %s758_s22 = scalar_lea.sflag [#allocation5], %s757_s14 }
 0x14f   : > { %1166 = dma.done.wait (!%p993_p12), %s758_s22, 256  }
 0x150   : > { %1168 = vsyncadd (!%p993_p12), %s758_s22, 4294967040  ;;  %p23_p5 = scmp.ge.s32.totalorder %s1265_s15, 5   ;;  %s1545_s30 = smov %s1175_s10 }
 0x151   : > { %s1546_s10 = smov %s1179_s11  ;;  %s1547_s11 = smov %s1278_s18 }
 0x152   : > { %s1548_s12 = smov %s1265_s15  ;;  %25 = sbr.rel (!%p23_p5) target bundleno = 7 (0x7), region = 115 }
 0x159   :  { %772 = vsyncpa [#allocation3], 1 }
 0x15a   :  { %774 = vsyncpa [#allocation3 + $0x1], 1 }
 0x15b   :  { %775 = vsyncpa [#allocation5], 1 }
 0x15c   :  { %777 = vsyncpa [#allocation5 + $0x1], 1 }

</bundles_post_ra>
